<compile_context>
chip_gen: v7x
topology: tpu7x:2x2x1
jax: 0.10.0
libtpu: 0.0.40
codegen_flags: <defaults>
</compile_context>

<pallas_src>
import functools
import math

import jax
import jax.numpy as jnp
from jax.experimental import pallas as pl
from jax.experimental.pallas import tpu as pltpu

_LANES = 128
_SUB_ROWS = 256        # rows per in-kernel accumulation chunk (256*128*4B = 128 KiB)
_MIN_GRID = 4          # keep >= 4 grid steps so both v7x TensorCores get work

_POS_INF_KEY = 0xFF800000   # order key of +inf
_NEG_INF_KEY = 0x007FFFFF   # order key of -inf


def _cdiv(a, b):
    return -(-a // b)


def _round_up(a, b):
    return _cdiv(a, b) * b


# ---------------------------------------------------------------------------
# Quantile threshold: exact order statistics via streaming counting bisection.
# ---------------------------------------------------------------------------

def _float_from_key(key):
    """Inverse of the order-preserving f32 -> uint32 key map."""
    bits = jnp.where((key >> 31) == jnp.uint32(1),
                     key & jnp.uint32(0x7FFFFFFF),   # originally positive
                     ~key)                           # originally negative
    return jax.lax.bitcast_convert_type(bits, jnp.float32)


def _kth_smallest(x_flat, k):
    """Exact k-th smallest (0-indexed) value of x_flat, as f32.

    32-step bisection over the order-preserving uint32 key space of f32: each
    step is one O(N) streaming count (compare + sum) -- no sort, no top_k, no
    N-sized intermediate.  The search range is limited to [-inf, +inf] keys so
    every probed midpoint is a real float value.
    """
    kp1 = jnp.int32(k + 1)

    def step(_, rng):
        lo, hi = rng                                   # answer key in [lo, hi]
        mid = lo + (hi - lo) // jnp.uint32(2)
        mid_val = _float_from_key(mid)
        cnt = jnp.sum((x_flat <= mid_val).astype(jnp.int32))
        go_down = cnt >= kp1
        return (jnp.where(go_down, lo, mid + jnp.uint32(1)),
                jnp.where(go_down, mid, hi))

    lo, _ = jax.lax.fori_loop(
        0, 32, step, (jnp.uint32(_NEG_INF_KEY), jnp.uint32(_POS_INF_KEY)))
    return _float_from_key(lo)


def _quantile_threshold(x_flat, q):
    """quantile(x, q) with linear interpolation from two order statistics.

    Matches torch.quantile for finite inputs.  (NaN inputs do not propagate
    the way torch.quantile propagates them.)
    """
    n = x_flat.shape[0]
    if n == 1:
        return x_flat.reshape(()).astype(jnp.float32)
    pos = q * (n - 1)
    lo = min(max(int(math.floor(pos)), 0), n - 1)
    hi = min(lo + 1, n - 1)
    frac = pos - lo

    a_lo = _kth_smallest(x_flat, lo)
    if hi == lo or frac == 0.0:
        return a_lo

    # (lo+1)-th smallest from one extra streaming pass: it equals a_lo if a_lo
    # occurs at least (hi+1) times at-or-below, otherwise the smallest element
    # strictly above a_lo.
    cnt_le = jnp.sum((x_flat <= a_lo).astype(jnp.int32))
    nxt = jnp.min(jnp.where(x_flat > a_lo,
                            x_flat.astype(jnp.float32),
                            jnp.float32(jnp.inf)))
    a_hi = jnp.where(cnt_le >= jnp.int32(hi + 1), a_lo, nxt)
    return a_lo * jnp.float32(1.0 - frac) + a_hi * jnp.float32(frac)


# ---------------------------------------------------------------------------
# Pallas kernel: streaming BCE-with-pseudo-label reduction.
# ---------------------------------------------------------------------------

def _conf_loss_kernel(t_ref, x_ref, out_ref, *, tile_rows, sub_rows, n_valid,
                      scale, mask_last, num_tiles):
    """One row-tile of the BCE reduction.

    t_ref:   (1,)              f32 threshold, SMEM.
    x_ref:   (tile_rows, 128)  logits tile, VMEM (f32 or bf16).
    out_ref: (1, 1, 128)       f32 lane partial sums (already scaled by `scale`).
    """
    i = pl.program_id(0)
    t = t_ref[0]
    n_sub = tile_rows // sub_rows

    def chunk_partial(r0, masked):
        x = x_ref[pl.ds(r0, sub_rows), :].astype(jnp.float32)
        # BCE-with-logits against pseudo label y = (x > t):
        #   y==1 -> softplus(-x), y==0 -> softplus(x)
        #   softplus(z) = max(z, 0) + log1p(exp(-|z|)),  with |z| == |x|.
        # TODO(synk): on v7x this is EUP-bound (exp+log1p per element); a bf16
        # EUP path would ~double throughput at the cost of f32 parity.
        z = jnp.where(x > t, -x, x)
        per = jnp.maximum(z, 0.0) + jnp.log1p(jnp.exp(-jnp.abs(x)))
        if masked:
            # Only the last tile pays for the padded / ragged-tail mask.
            row = jax.lax.broadcasted_iota(jnp.int32, (sub_rows, _LANES), 0)
            col = jax.lax.broadcasted_iota(jnp.int32, (sub_rows, _LANES), 1)
            flat = (i * tile_rows + r0 + row) * _LANES + col
            per = jnp.where(flat < n_valid, per, 0.0)
        return jnp.sum(per, axis=0, keepdims=True)          # (1, 128) lane partial

    def tile_partial(masked):
        if n_sub == 1:
            acc = chunk_partial(0, masked)
        else:
            acc = jax.lax.fori_loop(
                0, n_sub,
                lambda c, a: a + chunk_partial(
                    pl.multiple_of(c * sub_rows, sub_rows), masked),
                jnp.zeros((1, _LANES), jnp.float32))
        return (acc * scale).reshape(1, 1, _LANES)

    if not mask_last:
        out_ref[...] = tile_partial(False)
    elif num_tiles == 1:
        out_ref[...] = tile_partial(True)
    else:
        @pl.when(i < num_tiles - 1)
        def _():
            out_ref[...] = tile_partial(False)

        @pl.when(i == num_tiles - 1)
        def _():
            out_ref[...] = tile_partial(True)


def _choose_tile_rows(rows):
    kind = jax.devices()[0].device_kind.lower()
    # v7x: ~3.2 TB/s HBM needs ~4 MiB blocks to amortize the ~0.35 us/step
    # overhead; v5e/v6e: 1 MiB blocks already reach ~85% of HBM roofline.
    max_tile = 8192 if ("v7" in kind or "7x" in kind) else 2048
    if rows <= _SUB_ROWS:
        return rows                       # single block == full row extent
    t = _round_up(max(_cdiv(rows, _MIN_GRID), 1), _SUB_ROWS)
    return max(_SUB_ROWS, min(max_tile, t))


@functools.partial(jax.jit, static_argnames=("p", "reduction"))
def conf_loss(logits, p: float = 0.5, reduction: str = "mean"):
    assert logits.ndim == 2 and logits.shape[1] == 1
    n = logits.shape[0]

    x_flat = logits.reshape(-1)
    if x_flat.dtype not in (jnp.float32, jnp.bfloat16):
        x_flat = x_flat.astype(jnp.float32)

    # Threshold: two exact order statistics via counting bisection (no sort,
    # no top_k), computed in the wrapper and fed to the kernel through SMEM.
    t = _quantile_threshold(x_flat, 1.0 - p).astype(jnp.float32).reshape(1)

    # Lane-dense layout.  Pad only to the 128-lane boundary (nothing when
    # n % 128 == 0); the ragged last grid block is handled by the in-kernel
    # mask instead of padding the whole array up to a tile multiple.
    rows = _cdiv(n, _LANES)
    pad = rows * _LANES - n
    if pad:
        # TODO(synk): for n % 128 != 0 this is still one extra copy of the
        # input; CompilerParams(allow_input_fusion=[1]) could fold it into the
        # kernel's input DMA.
        x_flat = jnp.pad(x_flat, (0, pad))
    x2d = x_flat.reshape(rows, _LANES)

    tile_rows = _choose_tile_rows(rows)
    sub_rows = min(tile_rows, _SUB_ROWS)
    grid = _cdiv(rows, tile_rows)
    mask_last = grid * tile_rows * _LANES > n

    if reduction == "mean":
        scale = 1.0 / float(n)            # fold the mean into the kernel
    elif reduction == "sum":
        scale = 1.0
    else:
        # TODO(synk): reduction=None (per-element loss) not implemented.
        raise NotImplementedError("only 'mean' and 'sum' reductions are implemented")

    kernel = functools.partial(
        _conf_loss_kernel, tile_rows=tile_rows, sub_rows=sub_rows, n_valid=n,
        scale=scale, mask_last=mask_last, num_tiles=grid)

    itemsize = jnp.dtype(x2d.dtype).itemsize
    cost = pl.CostEstimate(
        flops=6 * n,
        transcendentals=2 * n,
        bytes_accessed=rows * _LANES * itemsize + grid * _LANES * 4 + 4)

    partials = pl.pallas_call(
        kernel,
        out_shape=jax.ShapeDtypeStruct((grid, 1, _LANES), jnp.float32),
        grid=(grid,),
        in_specs=[
            pl.BlockSpec(memory_space=pltpu.MemorySpace.SMEM),      # t, shape (1,)
            pl.BlockSpec((tile_rows, _LANES), lambda i: (i, 0)),    # lane-dense logits
        ],
        out_specs=pl.BlockSpec((1, 1, _LANES), lambda i: (i, 0, 0)),
        compiler_params=pltpu.CompilerParams(
            dimension_semantics=("parallel",)),
        cost_estimate=cost,
    )(t, x2d)

    # Tiny (grid, 1, 128) partial array -> scalar; mean/sum scale already applied.
    return jnp.sum(partials)


def _conf_loss_ref(logits, p=0.5):
    """Pure-JAX reference mirroring the PyTorch forward."""
    x = logits.astype(jnp.float32)
    t = jnp.quantile(x, 1.0 - p)
    y = (x > t).astype(jnp.float32)
    per_elem = jnp.maximum(x, 0.0) - x * y + jnp.log1p(jnp.exp(-jnp.abs(x)))
    return jnp.mean(per_elem)


if __name__ == "__main__":
    key = jax.random.PRNGKey(0)
    k0, k1, k2 = jax.random.split(key, 3)

    cases = [
        # Small shape matching the module's [BATCH_SIZE, 1] contract.
        jax.random.normal(k0, (8, 1), dtype=jnp.float32),
        # Non-multiple-of-128 batch (lane pad + in-kernel tail mask).
        2.0 * jax.random.normal(k1, (300, 1), dtype=jnp.float32) + 0.3,
        # Larger batch: multi-tile grid, in-kernel chunk loop, ragged last tile.
        jax.random.normal(k2, (150_000, 1), dtype=jnp.float32),
    ]

    for x in cases:
        loss = jax.block_until_ready(conf_loss(x, p=0.5, reduction="mean"))
        ref = jax.block_until_ready(_conf_loss_ref(x, p=0.5))
        assert jnp.allclose(loss, ref, rtol=1e-5, atol=1e-5), (x.shape, loss, ref)

    print("KERNEL_OK")
</pallas_src>

<mosaic_0001>
module attributes {stable_mosaic.version = 11 : i64} {
  func.func @_conf_loss_kernel(%arg0: i32, %arg1: memref<1xf32, #tpu.memory_space<smem>>, %arg2: memref<1x128xf32, #tpu.memory_space<vmem>>, %arg3: memref<1x1x128xf32, #tpu.memory_space<vmem>>) attributes {dimension_semantics = [#tpu.dimension_semantics<parallel>], iteration_bounds = array<i64: 1>, scalar_prefetch = 0 : i64, scratch_operands = 0 : i64, tpu.core_type = #tpu.core_type<tc>, window_params = [{transform_indices = @transform_0, window_bounds = array<i64: 1>}, {transform_indices = @transform_1, window_bounds = array<i64: 1, 128>}, {transform_indices = @transform_2, window_bounds = array<i64: 1, 1, 128>}]} {
    %c0 = arith.constant 0 : index
    %0 = memref.load %arg1[%c0] : memref<1xf32, #tpu.memory_space<smem>>
    %c0_0 = arith.constant 0 : index
    %c0_1 = arith.constant 0 : index
    %1 = vector.load %arg2[%c0_0, %c0_1] : memref<1x128xf32, #tpu.memory_space<vmem>>, vector<1x128xf32>
    %2 = vector.broadcast %0 : f32 to vector<1x128xf32>
    %3 = arith.cmpf ogt, %1, %2 : vector<1x128xf32>
    %cst = arith.constant 0.000000e+00 : f32
    %4 = vector.broadcast %cst : f32 to vector<1x128xf32>
    %5 = arith.subf %4, %1 : vector<1x128xf32>
    %6 = arith.select %3, %5, %1 : vector<1x128xi1>, vector<1x128xf32>
    %cst_2 = arith.constant 0.000000e+00 : f32
    %7 = vector.broadcast %cst_2 : f32 to vector<1x128xf32>
    %8 = arith.maximumf %6, %7 : vector<1x128xf32>
    %9 = math.absf %1 : vector<1x128xf32>
    %cst_3 = arith.constant 0.000000e+00 : f32
    %10 = vector.broadcast %cst_3 : f32 to vector<1x128xf32>
    %11 = arith.subf %10, %9 : vector<1x128xf32>
    %12 = math.exp %11 : vector<1x128xf32>
    %13 = math.log1p %12 : vector<1x128xf32>
    %14 = arith.addf %8, %13 : vector<1x128xf32>
    %15 = tpu.iota {dimensions = array<i32: 0>} : vector<1x128xi32>
    %16 = tpu.iota {dimensions = array<i32: 1>} : vector<1x128xi32>
    %c1_i32 = arith.constant 1 : i32
    %17 = arith.muli %arg0, %c1_i32 : i32
    %c0_i32 = arith.constant 0 : i32
    %18 = arith.addi %17, %c0_i32 : i32
    %19 = vector.broadcast %18 : i32 to vector<1x128xi32>
    %20 = arith.addi %19, %15 : vector<1x128xi32>
    %c128_i32 = arith.constant 128 : i32
    %21 = vector.broadcast %c128_i32 : i32 to vector<1x128xi32>
    %22 = arith.muli %20, %21 : vector<1x128xi32>
    %23 = arith.addi %22, %16 : vector<1x128xi32>
    %c8_i32 = arith.constant 8 : i32
    %24 = vector.broadcast %c8_i32 : i32 to vector<1x128xi32>
    %25 = arith.cmpi slt, %23, %24 : vector<1x128xi32>
    %cst_4 = arith.constant 0.000000e+00 : f32
    %26 = vector.broadcast %cst_4 : f32 to vector<1x128xf32>
    %27 = arith.select %25, %14, %26 : vector<1x128xi1>, vector<1x128xf32>
    %cst_5 = arith.constant dense<0.000000e+00> : vector<128xf32>
    %28 = vector.multi_reduction <add>, %27, %cst_5 [0] : vector<1x128xf32> to vector<128xf32>
    %29 = vector.shape_cast %28 : vector<128xf32> to vector<1x128xf32>
    %cst_6 = arith.constant 1.250000e-01 : f32
    %30 = vector.broadcast %cst_6 : f32 to vector<1x128xf32>
    %31 = arith.mulf %29, %30 : vector<1x128xf32>
    %32 = vector.shape_cast %31 : vector<1x128xf32> to vector<1x1x128xf32>
    %c0_7 = arith.constant 0 : index
    %c0_8 = arith.constant 0 : index
    %c0_9 = arith.constant 0 : index
    %33 = vector.load %arg3[%c0_7, %c0_8, %c0_9] : memref<1x1x128xf32, #tpu.memory_space<vmem>>, vector<1x1x128xf32>
    tpu.vector_store %arg3[%c0_7, %c0_8, %c0_9], %32 {strides = array<i32>} : memref<1x1x128xf32, #tpu.memory_space<vmem>>, vector<1x1x128xf32>,
    return
  }
  func.func @transform_0(%arg0: i32) -> i32 {
    %c0_i32 = arith.constant 0 : i32
    %c0_i32_0 = arith.constant 0 : i32
    return %c0_i32 : i32
  }
  func.func @transform_1(%arg0: i32) -> (i32, i32) {
    %c0_i32 = arith.constant 0 : i32
    %c0_i32_0 = arith.constant 0 : i32
    return %arg0, %c0_i32 : i32, i32
  }
  func.func @transform_2(%arg0: i32) -> (i32, i32, i32) {
    %c0_i32 = arith.constant 0 : i32
    %c0_i32_0 = arith.constant 0 : i32
    %c0_i32_1 = arith.constant 0 : i32
    return %arg0, %c0_i32, %c0_i32_0 : i32, i32, i32
  }
}

</mosaic_0001>

<bundles_post_ra>
// kernel: conf_loss.1
= control target key start
LH: loop header
LB: loop body
LE: loop exit
PB: predicated region body
PF: predicated region fallthrough
CT: control target
= control target key end

     0   :  { %v33_v5 = vlaneseq  ;;  %s78_s1 = inlined_call_operand.vmem [shape: f32[1,128], index: 1, kind: input, shape index: {}]   ;;  %s79_s0 = inlined_call_operand.<no memory space> [shape: f32[1], index: 0, kind: input, shape index: {}]   ;;  %s80_s2 = inlined_call_operand.vmem [shape: f32[1,1,128], index: 2, kind: output, shape index: {}]  }
   0x1   :  { %v13_v0 = vld [vmem:[%s78_s1] sm:$0x1]  ;;  %v14_v7 = vstv %s79_s0 }
   0x2   :  { %v19_v1 = vand.u32 2147483647, %v13_v0  ;;  %v34_v9 = vshrl.u32 %v33_v5, 7  ;;  %v16_v10 = vsub.f32 0.0, %v13_v0  ;;  %vm15_vm0 = vcmp.gt.f32.partialorder %v13_v0, %v14_v7 }
   0x3   :  { %v36_v12 = vand.u32 127, %v33_v5 }
   0x4   :  { %v20_v2 = vsub.f32 0.0, %v19_v1  ;;  %v39_v13 = vmul.u32 128, %v34_v9  ;;  %v17_v15 = vsel %vm15_vm0, %v16_v10, %v13_v0 }
   0x5   :  { %v18_v19 = vmax.f32 %v17_v15, 0.0 }
   0x6   :  { %v21_v3 = vmul.f32 1.442695, %v20_v2  ;;  %v40_v17 = vadd.s32 %v39_v13, %v36_v12 }
   0x8   :  { %50 = vpow2.f32 %v21_v3  ;;  %vm41_vm2 = vcmp.lt.s32.totalorder %v40_v17, 8 }
  0x12   :  { %v51_v4 = vpop.eup %50 }
  0x13   :  { %v23_v6 = vadd.f32 1.0, %v51_v4  ;;  %v26_v8 = vmul.f32 -0.5, %v51_v4  ;;  %v29_v14 = vand.u32 2147483647, %v51_v4 }
  0x15   :  { %52 = vlog2.f32 %v23_v6  ;;  %v27_v11 = vadd.f32 1.0, %v26_v8  ;;  %vm30_vm1 = vcmp.lt.f32.partialorder %v29_v14, 0.0004427343 }
  0x17   :  { %v28_v16 = vmul.f32 %v51_v4, %v27_v11 }
  0x1f   :  { %v53_v18 = vpop.eup %52 }
  0x20   :  { %v25_v20 = vmul.f32 0.6931472, %v53_v18 }
  0x22   :  { %v31_v21 = vsel %vm30_vm1, %v28_v16, %v25_v20 }
  0x23   :  { %v32_v22 = vadd.f32 %v31_v21, %v18_v19 }
  0x25   :  { %v42_v23 = vsel %vm41_vm2, %v32_v22, 0.0 }
  0x26   :  { %v44_v24 = vmul.f32 0.125, %v42_v23 }
  0x28   :  { %45 = vst [vmem:[%s80_s2] sm:$0x1] %v44_v24 }

</bundles_post_ra>
